<compile_context>
chip_gen: v6e
topology: v6e:2x2x1
jax: 0.10.0
libtpu: 0.0.40
codegen_flags: <defaults>
</compile_context>

<pallas_src>
import functools

import jax
import jax.numpy as jnp
from jax.experimental import pallas as pl
from jax.experimental.pallas import tpu as pltpu


def _round_up(n, m):
    return ((n + m - 1) // m) * m


def _bf16_eup_ok():
    """bf16 tanh is a win on v6e/v7x (bf16 EUP/VPU); keep f32 activations on
    v5e and older, where bf16 transcendentals would be emulated via casts."""
    try:
        kind = jax.devices()[0].device_kind.lower()
    except Exception:
        return False
    return not any(tag in kind for tag in ("v2", "v3", "v4", "v5"))


def _subnet_kernel(x_ref, w1_ref, b1_ref, w2_ref, b2_ref, w3_ref, b3_ref,
                   y2_ref, y3_ref, *, bf16_act):
    # In-kernel bf16 cast of x (free VPU work under slack) instead of a
    # separate wrapper-side XLA cast pass over HBM.
    x = x_ref[...].astype(jnp.bfloat16)

    # linear_1 + tanh : bf16 MXU matmul, f32 accumulation, f32 bias add.
    h1 = jnp.dot(x, w1_ref[...], preferred_element_type=jnp.float32) + b1_ref[...]
    if bf16_act:
        # v6e/v7x: bf16-capable EUP -> bf16 tanh halves transcendental work;
        # the result feeds the next bf16 MXU push anyway.
        y1 = jnp.tanh(h1.astype(jnp.bfloat16))
    else:
        # v5e: no bf16 VPU/EUP; keep the activation in f32.
        y1 = jnp.tanh(h1).astype(jnp.bfloat16)

    # linear_2 + tanh (the "fusion" tensor y2).
    h2 = jnp.dot(y1, w2_ref[...], preferred_element_type=jnp.float32) + b2_ref[...]
    if bf16_act:
        y2 = jnp.tanh(h2.astype(jnp.bfloat16))
    else:
        y2 = jnp.tanh(h2)

    # linear_3 (logits, no activation).
    y3 = (jnp.dot(y2.astype(jnp.bfloat16), w3_ref[...],
                  preferred_element_type=jnp.float32) + b3_ref[...])

    # Natural-width stores (no lane padding); ragged last batch tile is masked.
    y2_ref[...] = y2.astype(y2_ref.dtype)
    y3_ref[...] = y3.astype(y3_ref.dtype)


def prepare_subnet_params(w1, b1, w2, b2, w3, b3):
    """One-time parameter prep, hoisted out of the per-call path:
    weights (in, out) -> bf16 (MXU dtype), biases -> f32 row vectors (1, out)."""
    return (
        w1.astype(jnp.bfloat16), b1.astype(jnp.float32).reshape(1, -1),
        w2.astype(jnp.bfloat16), b2.astype(jnp.float32).reshape(1, -1),
        w3.astype(jnp.bfloat16), b3.astype(jnp.float32).reshape(1, -1),
    )


def subnet_forward(x, w1, b1, w2, b2, w3, b3, *, batch_tile=512):
    """x: (B, in_size) in its native dtype.
    w*: bf16 (in, out) (= PyTorch W.T); b*: f32 (1, out). See prepare_subnet_params.
    Returns (y2, y3) with shapes (B, hidden) and (B, n_class) in x.dtype."""
    B, in_size = x.shape
    hidden = w1.shape[1]
    n_class = w3.shape[1]
    out_dtype = x.dtype

    # Batch tiling: no padding.  Keep the tile a multiple of 8 and cap it at
    # ceil(B/2) so the parallel grid has >= 2 steps (both TCs busy on v7x).
    half = _round_up(max(1, -(-B // 2)), 8)
    bt = max(8, min(batch_tile, half))
    grid = (pl.cdiv(B, bt),)

    # Per-step VMEM footprint (double-buffered tiles + resident weights/biases).
    tile_vmem = (
        2 * bt * in_size * x.dtype.itemsize                      # x tiles
        + 2 * bt * hidden * jnp.dtype(out_dtype).itemsize        # y2 tiles
        + 2 * bt * n_class * jnp.dtype(out_dtype).itemsize       # y3 tiles
        + (in_size * hidden + hidden * hidden + hidden * n_class) * 2  # bf16 W
        + (2 * hidden + n_class) * 4                              # f32 biases
    )
    vmem_limit = int(max(2 * tile_vmem, 4 * 1024 * 1024))

    # Feature dims equal the full array dims, so natural-width blocks are legal
    # (the (8,128) divisibility rule only applies to partial blocks).
    x_spec = pl.BlockSpec((bt, in_size), lambda i: (i, 0))
    w1_spec = pl.BlockSpec((in_size, hidden), lambda i: (0, 0))
    b1_spec = pl.BlockSpec((1, hidden), lambda i: (0, 0))
    w2_spec = pl.BlockSpec((hidden, hidden), lambda i: (0, 0))
    b2_spec = pl.BlockSpec((1, hidden), lambda i: (0, 0))
    w3_spec = pl.BlockSpec((hidden, n_class), lambda i: (0, 0))
    b3_spec = pl.BlockSpec((1, n_class), lambda i: (0, 0))

    y2_spec = pl.BlockSpec((bt, hidden), lambda i: (i, 0))
    y3_spec = pl.BlockSpec((bt, n_class), lambda i: (i, 0))

    y2, y3 = pl.pallas_call(
        functools.partial(_subnet_kernel, bf16_act=_bf16_eup_ok()),
        out_shape=(
            jax.ShapeDtypeStruct((B, hidden), out_dtype),
            jax.ShapeDtypeStruct((B, n_class), out_dtype),
        ),
        grid=grid,
        in_specs=[x_spec, w1_spec, b1_spec, w2_spec, b2_spec, w3_spec, b3_spec],
        out_specs=(y2_spec, y3_spec),
        compiler_params=pltpu.CompilerParams(
            dimension_semantics=("parallel",),
            vmem_limit_bytes=vmem_limit,
        ),
    )(x, w1, b1, w2, b2, w3, b3)

    return y2, y3


def _init_params(key, in_size, hidden_size, n_class, dtype=jnp.float32):
    """Deterministic synthetic params. Weights stored (in, out) = PyTorch W.T."""
    ks = jax.random.split(key, 6)

    def lin(kw, kb, fan_in, fan_out):
        bound = 1.0 / jnp.sqrt(fan_in)
        w = jax.random.uniform(kw, (fan_in, fan_out), dtype, -bound, bound)
        b = jax.random.uniform(kb, (fan_out,), dtype, -bound, bound)
        return w, b

    w1, b1 = lin(ks[0], ks[1], in_size, hidden_size)
    w2, b2 = lin(ks[2], ks[3], hidden_size, hidden_size)
    w3, b3 = lin(ks[4], ks[5], hidden_size, n_class)
    return w1, b1, w2, b2, w3, b3


def _reference(x, w1, b1, w2, b2, w3, b3):
    y1 = jnp.tanh(x @ w1 + b1)
    y2 = jnp.tanh(y1 @ w2 + b2)
    y3 = y2 @ w3 + b3
    return y2, y3


if __name__ == "__main__":
    key = jax.random.PRNGKey(0)
    # Feature dims follow the module (in=32, hidden=32, n_class=8); batch=512
    # so the parallel grid has 2 steps (both TensorCores busy on v7x).
    batch, in_size, hidden_size, n_class = 512, 32, 32, 8

    kx, kp = jax.random.split(key)
    x = jax.random.normal(kx, (batch, in_size), dtype=jnp.float32)
    raw_params = _init_params(kp, in_size, hidden_size, n_class)
    params = prepare_subnet_params(*raw_params)   # one-time prep, reused per call

    y2, y3 = subnet_forward(x, *params, batch_tile=512)
    jax.block_until_ready((y2, y3))

    y2_ref, y3_ref = _reference(x, *raw_params)
    assert y2.shape == (batch, hidden_size)
    assert y3.shape == (batch, n_class)
    # bf16 matmul inputs / bf16 tanh on v6e+ with f32 accumulation -> loosened
    # tolerance vs. the pure-f32 reference.
    assert jnp.allclose(y2, y2_ref, atol=3e-2, rtol=3e-2)
    assert jnp.allclose(y3, y3_ref, atol=3e-2, rtol=3e-2)

    # TODO(synk): dropout is declared in the PyTorch __init__ but never applied
    # in forward(), so it is intentionally not implemented.
    print("KERNEL_OK")
</pallas_src>

<mosaic_0001>
module attributes {stable_mosaic.version = 11 : i64} {
  func.func @_subnet_kernel(%arg0: i32, %arg1: memref<256x32xf32, #tpu.memory_space<vmem>>, %arg2: memref<32x32xbf16, #tpu.memory_space<vmem>>, %arg3: memref<1x32xf32, #tpu.memory_space<vmem>>, %arg4: memref<32x32xbf16, #tpu.memory_space<vmem>>, %arg5: memref<1x32xf32, #tpu.memory_space<vmem>>, %arg6: memref<32x8xbf16, #tpu.memory_space<vmem>>, %arg7: memref<1x8xf32, #tpu.memory_space<vmem>>, %arg8: memref<256x32xf32, #tpu.memory_space<vmem>>, %arg9: memref<256x8xf32, #tpu.memory_space<vmem>>) attributes {dimension_semantics = [#tpu.dimension_semantics<parallel>], iteration_bounds = array<i64: 2>, scalar_prefetch = 0 : i64, scratch_operands = 0 : i64, tpu.core_type = #tpu.core_type<tc>, window_params = [{transform_indices = @transform_0, window_bounds = array<i64: 256, 32>}, {pipeline_mode = #tpu.pipeline_mode<synchronous>, transform_indices = @transform_1, window_bounds = array<i64: 32, 32>}, {pipeline_mode = #tpu.pipeline_mode<synchronous>, transform_indices = @transform_2, window_bounds = array<i64: 1, 32>}, {pipeline_mode = #tpu.pipeline_mode<synchronous>, transform_indices = @transform_3, window_bounds = array<i64: 32, 32>}, {pipeline_mode = #tpu.pipeline_mode<synchronous>, transform_indices = @transform_4, window_bounds = array<i64: 1, 32>}, {pipeline_mode = #tpu.pipeline_mode<synchronous>, transform_indices = @transform_5, window_bounds = array<i64: 32, 8>}, {pipeline_mode = #tpu.pipeline_mode<synchronous>, transform_indices = @transform_6, window_bounds = array<i64: 1, 8>}, {transform_indices = @transform_7, window_bounds = array<i64: 256, 32>}, {transform_indices = @transform_8, window_bounds = array<i64: 256, 8>}]} {
    %c0 = arith.constant 0 : index
    %c0_0 = arith.constant 0 : index
    %0 = vector.load %arg1[%c0, %c0_0] : memref<256x32xf32, #tpu.memory_space<vmem>>, vector<256x32xf32>
    %1 = arith.truncf %0 : vector<256x32xf32> to vector<256x32xbf16>
    %c0_1 = arith.constant 0 : index
    %c0_2 = arith.constant 0 : index
    %2 = vector.load %arg2[%c0_1, %c0_2] : memref<32x32xbf16, #tpu.memory_space<vmem>>, vector<32x32xbf16>
    %cst = arith.constant dense<0.000000e+00> : vector<256x32xf32>
    %3 = tpu.matmul %1, %2, %cst {dimension_numbers = #tpu.dot_dimension_numbers<[1], [0], [0], [1], [0, 0, 1, 1], [], []>} : vector<256x32xbf16>, vector<32x32xbf16>, vector<256x32xf32> -> vector<256x32xf32>
    %c0_3 = arith.constant 0 : index
    %c0_4 = arith.constant 0 : index
    %4 = vector.load %arg3[%c0_3, %c0_4] : memref<1x32xf32, #tpu.memory_space<vmem>>, vector<1x32xf32>
    %5 = vector.broadcast %4 : vector<1x32xf32> to vector<256x32xf32>
    %6 = arith.addf %3, %5 : vector<256x32xf32>
    %7 = arith.truncf %6 : vector<256x32xf32> to vector<256x32xbf16>
    %8 = math.tanh %7 : vector<256x32xbf16>
    %c0_5 = arith.constant 0 : index
    %c0_6 = arith.constant 0 : index
    %9 = vector.load %arg4[%c0_5, %c0_6] : memref<32x32xbf16, #tpu.memory_space<vmem>>, vector<32x32xbf16>
    %cst_7 = arith.constant dense<0.000000e+00> : vector<256x32xf32>
    %10 = tpu.matmul %8, %9, %cst_7 {dimension_numbers = #tpu.dot_dimension_numbers<[1], [0], [0], [1], [0, 0, 1, 1], [], []>} : vector<256x32xbf16>, vector<32x32xbf16>, vector<256x32xf32> -> vector<256x32xf32>
    %c0_8 = arith.constant 0 : index
    %c0_9 = arith.constant 0 : index
    %11 = vector.load %arg5[%c0_8, %c0_9] : memref<1x32xf32, #tpu.memory_space<vmem>>, vector<1x32xf32>
    %12 = vector.broadcast %11 : vector<1x32xf32> to vector<256x32xf32>
    %13 = arith.addf %10, %12 : vector<256x32xf32>
    %14 = arith.truncf %13 : vector<256x32xf32> to vector<256x32xbf16>
    %15 = math.tanh %14 : vector<256x32xbf16>
    %c0_10 = arith.constant 0 : index
    %c0_11 = arith.constant 0 : index
    %16 = vector.load %arg6[%c0_10, %c0_11] : memref<32x8xbf16, #tpu.memory_space<vmem>>, vector<32x8xbf16>
    %cst_12 = arith.constant dense<0.000000e+00> : vector<256x8xf32>
    %17 = tpu.matmul %15, %16, %cst_12 {dimension_numbers = #tpu.dot_dimension_numbers<[1], [0], [0], [1], [0, 0, 1, 1], [], []>} : vector<256x32xbf16>, vector<32x8xbf16>, vector<256x8xf32> -> vector<256x8xf32>
    %c0_13 = arith.constant 0 : index
    %c0_14 = arith.constant 0 : index
    %18 = vector.load %arg7[%c0_13, %c0_14] : memref<1x8xf32, #tpu.memory_space<vmem>>, vector<1x8xf32>
    %19 = vector.broadcast %18 : vector<1x8xf32> to vector<256x8xf32>
    %20 = arith.addf %17, %19 : vector<256x8xf32>
    %21 = arith.extf %15 : vector<256x32xbf16> to vector<256x32xf32>
    %c0_15 = arith.constant 0 : index
    %c0_16 = arith.constant 0 : index
    %22 = vector.load %arg8[%c0_15, %c0_16] : memref<256x32xf32, #tpu.memory_space<vmem>>, vector<256x32xf32>
    tpu.vector_store %arg8[%c0_15, %c0_16], %21 {strides = array<i32>} : memref<256x32xf32, #tpu.memory_space<vmem>>, vector<256x32xf32>,
    %c0_17 = arith.constant 0 : index
    %c0_18 = arith.constant 0 : index
    %23 = vector.load %arg9[%c0_17, %c0_18] : memref<256x8xf32, #tpu.memory_space<vmem>>, vector<256x8xf32>
    tpu.vector_store %arg9[%c0_17, %c0_18], %20 {strides = array<i32>} : memref<256x8xf32, #tpu.memory_space<vmem>>, vector<256x8xf32>,
    return
  }
  func.func @transform_0(%arg0: i32) -> (i32, i32) {
    %c0_i32 = arith.constant 0 : i32
    %c0_i32_0 = arith.constant 0 : i32
    return %arg0, %c0_i32 : i32, i32
  }
  func.func @transform_1(%arg0: i32) -> (i32, i32) {
    %c0_i32 = arith.constant 0 : i32
    %c0_i32_0 = arith.constant 0 : i32
    %c0_i32_1 = arith.constant 0 : i32
    return %c0_i32, %c0_i32_0 : i32, i32
  }
  func.func @transform_2(%arg0: i32) -> (i32, i32) {
    %c0_i32 = arith.constant 0 : i32
    %c0_i32_0 = arith.constant 0 : i32
    %c0_i32_1 = arith.constant 0 : i32
    return %c0_i32, %c0_i32_0 : i32, i32
  }
  func.func @transform_3(%arg0: i32) -> (i32, i32) {
    %c0_i32 = arith.constant 0 : i32
    %c0_i32_0 = arith.constant 0 : i32
    %c0_i32_1 = arith.constant 0 : i32
    return %c0_i32, %c0_i32_0 : i32, i32
  }
  func.func @transform_4(%arg0: i32) -> (i32, i32) {
    %c0_i32 = arith.constant 0 : i32
    %c0_i32_0 = arith.constant 0 : i32
    %c0_i32_1 = arith.constant 0 : i32
    return %c0_i32, %c0_i32_0 : i32, i32
  }
  func.func @transform_5(%arg0: i32) -> (i32, i32) {
    %c0_i32 = arith.constant 0 : i32
    %c0_i32_0 = arith.constant 0 : i32
    %c0_i32_1 = arith.constant 0 : i32
    return %c0_i32, %c0_i32_0 : i32, i32
  }
  func.func @transform_6(%arg0: i32) -> (i32, i32) {
    %c0_i32 = arith.constant 0 : i32
    %c0_i32_0 = arith.constant 0 : i32
    %c0_i32_1 = arith.constant 0 : i32
    return %c0_i32, %c0_i32_0 : i32, i32
  }
  func.func @transform_7(%arg0: i32) -> (i32, i32) {
    %c0_i32 = arith.constant 0 : i32
    %c0_i32_0 = arith.constant 0 : i32
    return %arg0, %c0_i32 : i32, i32
  }
  func.func @transform_8(%arg0: i32) -> (i32, i32) {
    %c0_i32 = arith.constant 0 : i32
    %c0_i32_0 = arith.constant 0 : i32
    return %arg0, %c0_i32 : i32, i32
  }
}

</mosaic_0001>

<bundles_post_ra>
// kernel: tpu_custom_call.1
= control target key start
LH: loop header
LB: loop body
LE: loop exit
PB: predicated region body
PF: predicated region fallthrough
CT: control target
= control target key end

     0   :  { %s1687_s27 = smov 0   ;;  %s2064_s0 = inlined_call_operand.vmem [shape: f32[512,32], index: 0, kind: input, shape index: {}]   ;;  %s2065_s1 = inlined_call_operand.vmem [shape: bf16[32,32], index: 1, kind: input, shape index: {}]   ;;  %s2066_s2 = inlined_call_operand.vmem [shape: f32[1,32], index: 2, kind: input, shape index: {}]   ;;  %s2067_s3 = inlined_call_operand.vmem [shape: bf16[32,32], index: 3, kind: input, shape index: {}]   ;;  %s2068_s4 = inlined_call_operand.vmem [shape: f32[1,32], index: 4, kind: input, shape index: {}]   ;;  %s2069_s5 = inlined_call_operand.vmem [shape: bf16[32,8], index: 5, kind: input, shape index: {}]   ;;  %s2070_s6 = inlined_call_operand.vmem [shape: f32[1,8], index: 6, kind: input, shape index: {}]   ;;  %s2071_s7 = inlined_call_operand.vmem [shape: f32[512,32], index: 7, kind: output, shape index: {0}]   ;;  %s2072_s8 = inlined_call_operand.vmem [shape: f32[512,8], index: 8, kind: output, shape index: {1}]  }
   0x1 LB: > { %s1320_s28 = sadd.s32 4294967295, %s1640_s27   ;;  %p1324_p0 = scmp.ge.s32.totalorder %s1640_s27, 1  ;;  %s1640_s27 = sphi %s1687_s27, %s19_s27  }
   0x2   : > { %p266_p1 = scmp.lt.s32.totalorder %s1640_s27, 3 }
   0x4   : > { %p267_p2 = pnand %p1324_p0, %p266_p1 }
   0x5   : > { %s1325_s9 = sshll.u32 (!%p267_p2), %s1320_s28, 5 }
   0x6   : > { %270 = sbr.rel (%p267_p2) target bundleno = 716 (0x2cc), region = 48  ;;  %p306_p3 = scmp.lt.s32.totalorder (!%p267_p2), %s1325_s9, 63 }
   0xb   : > { %v1564_v0 = vld [vmem:[%s2065_s1 + $0x8] sm:$0xff]   ;;  %v1565_v1 = vld [vmem:[%s2065_s1] sm:$0xff]   ;;  %s2074_s9 = smov (!%p306_p3, %s1325_s9), 63  ;;  %vm395_vm0 = vcmask 261120   ;;  %vm1197_vm1 = vcmask 64512  }
   0xc   : > { %1444 = vmatprep.subr.bf16.mxu0 %v1564_v0  ;;  %1552 = vmatprep.subr.bf16.mxu1 %v1564_v0  ;;  %v1566_v2 = vld [vmem:[%s2067_s3 + $0x8] sm:$0xff]   ;;  %s1704_s14 = sshll.u32 %s2074_s9, 3  ;;  %v1567_v51 = vld [vmem:[%s2067_s3] sm:$0xff]  }
   0xd   : > { %1445 = vmatpush3.bf16.msra.mxu0 %v1564_v0  ;;  %1554 = vmatpush3.bf16.msra.mxu1 %v1564_v0  ;;  %s1710_s17 = scalar_lea.vmem %s2064_s0, %s1704_s14  ;;  %v1568_v52 = vld [vmem:[%s2069_s5 + $0x8] sm:$0xff]   ;;  %v1769_v55 = vld [vmem:[%s2066_s2] ss:$0 sm:$0xff]  ;;  %s1850_s9 = scalar_lea.vmem %s2071_s7, %s1704_s14 }
   0xe   : > { %1446 = vmatprep.subr.bf16.mxu0 %v1565_v1  ;;  %1553 = vmatprep.subr.bf16.mxu1 %v1565_v1  ;;  %v324_v3 = vld [vmem:[%s1710_s17] sm:$0xff]  ;;  %v325_v4 = vld [vmem:[%s1710_s17 + $0x8] sm:$0xff]  ;;  %v326_v5 = vld [vmem:[%s1710_s17 + $0x10] sm:$0xff]  ;;  %s1963_s15 = scalar_lea.vmem %s2072_s8, %s1704_s14 }
   0xf   : > { %v356_v6 = vpack.c.bf16 %v325_v4, %v324_v3  ;;  %v327_v7 = vld [vmem:[%s1710_s17 + $0x18] sm:$0xff]  ;;  %v328_v8 = vld [vmem:[%s1710_s17 + $0x20] sm:$0xff]  ;;  %v329_v9 = vld [vmem:[%s1710_s17 + $0x28] sm:$0xff] }
  0x10   : > { %v357_v10 = vpack.c.bf16 %v327_v7, %v326_v5  ;;  %v358_v11 = vpack.c.bf16 %v329_v9, %v328_v8  ;;  %v330_v12 = vld [vmem:[%s1710_s17 + $0x30] sm:$0xff]  ;;  %v331_v13 = vld [vmem:[%s1710_s17 + $0x38] sm:$0xff]  ;;  %v332_v14 = vld [vmem:[%s1710_s17 + $0x40] sm:$0xff] }
  0x11   : > { %1447 = vmatpush3.bf16.msra.mxu0 %v1565_v1  ;;  %1555 = vmatpush3.bf16.msra.mxu1 %v1565_v1  ;;  %v333_v15 = vld [vmem:[%s1710_s17 + $0x48] sm:$0xff]  ;;  %v340_v16 = vld [vmem:[%s1710_s17 + $0x80] sm:$0xff]  ;;  %v342_v19 = vld [vmem:[%s1710_s17 + $0x90] sm:$0xff]  ;;  %v359_v24 = vpack.c.bf16 %v331_v13, %v330_v12 }
  0x12   : > { %1480 = vmatprep.subr.bf16.mxu1 %v1566_v2  ;;  %1448 = vmatprep.mubr.msk.bf16.mxu0 %vm395_vm0, %v356_v6  ;;  %v341_v17 = vld [vmem:[%s1710_s17 + $0x88] sm:$0xff]  ;;  %v343_v20 = vld [vmem:[%s1710_s17 + $0x98] sm:$0xff]  ;;  %v344_v21 = vld [vmem:[%s1710_s17 + $0xa0] sm:$0xff]  ;;  %v360_v26 = vpack.c.bf16 %v333_v15, %v332_v14 }
  0x13   : > { %v364_v18 = vpack.c.bf16 %v341_v17, %v340_v16  ;;  %v365_v22 = vpack.c.bf16 %v343_v20, %v342_v19  ;;  %v345_v23 = vld [vmem:[%s1710_s17 + $0xa8] sm:$0xff]  ;;  %v346_v27 = vld [vmem:[%s1710_s17 + $0xb0] sm:$0xff]  ;;  %v347_v28 = vld [vmem:[%s1710_s17 + $0xb8] sm:$0xff]  ;;  %1516 = vmatprep.subr.bf16.mxu0 %v1568_v52 }
  0x14   : > { %1449 = vmatmul.mubr.msk.bf16.vlgmr.msra.gmra.mxu0 %vm395_vm0, %v357_v10  ;;  %v366_v25 = vpack.c.bf16 %v345_v23, %v344_v21  ;;  %v348_v29 = vld [vmem:[%s1710_s17 + $0xc0] sm:$0xff]  ;;  %v349_v30 = vld [vmem:[%s1710_s17 + $0xc8] sm:$0xff]  ;;  %v334_v31 = vld [vmem:[%s1710_s17 + $0x50] sm:$0xff]  ;;  %v367_v33 = vpack.c.bf16 %v347_v28, %v346_v27 }
  0x15   : > { %1452 = vmatprep.mubr.msk.bf16.mxu0 %vm395_vm0, %v358_v11  ;;  %1464 = vmatprep.mubr.msk.bf16.mxu1 %vm395_vm0, %v364_v18  ;;  %v335_v32 = vld [vmem:[%s1710_s17 + $0x58] sm:$0xff]  ;;  %v336_v34 = vld [vmem:[%s1710_s17 + $0x60] sm:$0xff]  ;;  %v337_v35 = vld [vmem:[%s1710_s17 + $0x68] sm:$0xff]  ;;  %v368_v36 = vpack.c.bf16 %v349_v30, %v348_v29 }
  0x16   : > { %1465 = vmatmul.mubr.msk.bf16.vlgmr.msra.gmra.mxu1 %vm395_vm0, %v365_v22  ;;  %v361_v37 = vpack.c.bf16 %v335_v32, %v334_v31  ;;  %v362_v38 = vpack.c.bf16 %v337_v35, %v336_v34  ;;  %v350_v39 = vld [vmem:[%s1710_s17 + $0xd0] sm:$0xff]  ;;  %v351_v40 = vld [vmem:[%s1710_s17 + $0xd8] sm:$0xff]  ;;  %v352_v41 = vld [vmem:[%s1710_s17 + $0xe0] sm:$0xff]  ;;  %1517 = vmatpush3.bf16.msra.mxu0 %v1568_v52 }
  0x17   : > { %1468 = vmatprep.mubr.msk.bf16.mxu1 %vm395_vm0, %v366_v25  ;;  %1481 = vmatpush3.bf16.msra.mxu1 %v1566_v2  ;;  %v353_v42 = vld [vmem:[%s1710_s17 + $0xe8] sm:$0xff]  ;;  %v338_v43 = vld [vmem:[%s1710_s17 + $0x70] sm:$0xff]  ;;  %v339_v44 = vld [vmem:[%s1710_s17 + $0x78] sm:$0xff]  ;;  %v369_v45 = vpack.c.bf16 %v351_v40, %v350_v39 }
  0x18   : > { %v370_v46 = vpack.c.bf16 %v353_v42, %v352_v41  ;;  %v363_v47 = vpack.c.bf16 %v339_v44, %v338_v43  ;;  %v354_v48 = vld [vmem:[%s1710_s17 + $0xf0] sm:$0xff]  ;;  %v355_v49 = vld [vmem:[%s1710_s17 + $0xf8] sm:$0xff]  ;;  %1482 = vmatprep.subr.bf16.mxu1 %v1567_v51 }
  0x19   : > { %v371_v50 = vpack.c.bf16 %v355_v49, %v354_v48 }
  0x1b   : > { %1483 = vmatpush3.bf16.msra.mxu1 %v1567_v51 }
  0x1c   : > { %1453 = vmatmul.mubr.msk.bf16.gmra.mxu0 %vm395_vm0, %v359_v24 }
  0x1d   : > { %1456 = vmatprep.mubr.msk.bf16.mxu0 %vm395_vm0, %v360_v26 }
  0x1e   : > { %1469 = vmatmul.mubr.msk.bf16.gmra.mxu1 %vm395_vm0, %v367_v33 }
  0x1f   : > { %1472 = vmatprep.mubr.msk.bf16.mxu1 %vm395_vm0, %v368_v36 }
  0x24   : > { %1457 = vmatmul.mubr.msk.bf16.gmra.mxu0 %vm395_vm0, %v361_v37 }
  0x25   : > { %1460 = vmatprep.mubr.msk.bf16.mxu0 %vm395_vm0, %v362_v38 }
  0x26   : > { %1473 = vmatmul.mubr.msk.bf16.gmra.mxu1 %vm395_vm0, %v369_v45 }
  0x27   : > { %1476 = vmatprep.mubr.msk.bf16.mxu1 %vm395_vm0, %v370_v46 }
  0x2c   : > { %1461 = vmatmul.mubr.msk.bf16.gmra.mxu0 %vm395_vm0, %v363_v47 }
  0x2e   : > { %1477 = vmatmul.mubr.msk.bf16.gmra.mxu1 %vm395_vm0, %v371_v50 }
  0xd4   : > { %v1450_v53 = vpop.f32.mrf.mxu0 }
  0xd5   : > { %v487_v59 = vadd.f32 %v1450_v53, %v1769_v55 }
  0xd6   : > { %v478_v54 = vpop.f32.mrf.mxu0  ;;  %v1772_v58 = vpop.f32.mrf.mxu1 }
  0xd7   : > { %v479_v61 = vadd.f32 %v1769_v55, %v478_v54  ;;  %v551_v51 = vadd.f32 %v1772_v58, %v1769_v55 }
  0xd8   : > { %v1451_v56 = vpop.f32.mrf.mxu0  ;;  %v542_v63 = vpop.f32.mrf.mxu1 }
  0xd9   : > { %v490_v57 = vadd.f32 %v1451_v56, %v1769_v55  ;;  %v543_v34 = vadd.f32 %v1769_v55, %v542_v63 }
  0xda   : > { %v481_v60 = vpop.f32.mrf.mxu0  ;;  %v1467_v3 = vpop.f32.mrf.mxu1 }
  0xdb   : > { %v482_v62 = vadd.f32 %v1769_v55, %v481_v60  ;;  %v606_v0 = vpack.c.bf16 %v490_v57, %v487_v59  ;;  %v554_v52 = vadd.f32 %v1467_v3, %v1769_v55 }
  0xdc   : > { %v1454_v1 = vpop.f32.mrf.mxu0  ;;  %v545_v5 = vpop.f32.mrf.mxu1 }
  0xdd   : > { %v605_v2 = vpack.c.bf16 %v482_v62, %v479_v61  ;;  %v503_v9 = vadd.f32 %v1454_v1, %v1769_v55  ;;  %v546_v35 = vadd.f32 %v1769_v55, %v545_v5  ;;  %v614_v56 = vpack.c.bf16 %v554_v52, %v551_v51 }
  0xde   : > { %v494_v4 = vpop.f32.mrf.mxu0  ;;  %v1778_v8 = vpop.f32.mrf.mxu1 }
  0xdf   : > { %1570 = vtanh.bf16 %v605_v2  ;;  %v495_v11 = vadd.f32 %v1769_v55, %v494_v4  ;;  %v613_v41 = vpack.c.bf16 %v546_v35, %v543_v34  ;;  %v567_v58 = vadd.f32 %v1778_v8, %v1769_v55 }
  0xe0   : > { %1572 = vtanh.bf16 %v606_v0  ;;  %v1455_v6 = vpop.f32.mrf.mxu0  ;;  %v558_v13 = vpop.f32.mrf.mxu1 }
  0xe1   : > { %v506_v7 = vadd.f32 %v1455_v6, %v1769_v55  ;;  %v559_v49 = vadd.f32 %v1769_v55, %v558_v13 }
  0xe2   : > { %v497_v10 = vpop.f32.mrf.mxu0  ;;  %v1471_v17 = vpop.f32.mrf.mxu1 }
  0xe3   : > { %v498_v12 = vadd.f32 %v1769_v55, %v497_v10  ;;  %v608_v14 = vpack.c.bf16 %v506_v7, %v503_v9  ;;  %v570_v63 = vadd.f32 %v1471_v17, %v1769_v55 }
  0xe4   : > { %v1458_v15 = vpop.f32.mrf.mxu0  ;;  %v561_v19 = vpop.f32.mrf.mxu1 }
  0xe5   : > { %v607_v16 = vpack.c.bf16 %v498_v12, %v495_v11  ;;  %v519_v23 = vadd.f32 %v1458_v15, %v1769_v55  ;;  %v562_v50 = vadd.f32 %v1769_v55, %v561_v19  ;;  %v616_v3 = vpack.c.bf16 %v570_v63, %v567_v58 }
  0xe6   : > { %v510_v18 = vpop.f32.mrf.mxu0  ;;  %v1784_v22 = vpop.f32.mrf.mxu1 }
  0xe7   : > { %1574 = vtanh.bf16 %v607_v16  ;;  %v511_v25 = vadd.f32 %v1769_v55, %v510_v18  ;;  %v615_v54 = vpack.c.bf16 %v562_v50, %v559_v49  ;;  %v583_v8 = vadd.f32 %v1784_v22, %v1769_v55 }
  0xe8   : > { %1576 = vtanh.bf16 %v608_v14  ;;  %v1459_v20 = vpop.f32.mrf.mxu0  ;;  %v574_v29 = vpop.f32.mrf.mxu1 }
  0xe9   : > { %v522_v21 = vadd.f32 %v1459_v20, %v1769_v55  ;;  %v575_v61 = vadd.f32 %v1769_v55, %v574_v29 }
  0xea   : > { %v513_v24 = vpop.f32.mrf.mxu0  ;;  %v1475_v37 = vpop.f32.mrf.mxu1 }
  0xeb   : > { %v514_v26 = vadd.f32 %v1769_v55, %v513_v24  ;;  %v610_v27 = vpack.c.bf16 %v522_v21, %v519_v23  ;;  %v586_v10 = vadd.f32 %v1475_v37, %v1769_v55  ;;  %v1834_v24 = vld [vmem:[%s2068_s4] ss:$0 sm:$0xff] }
  0xec   : > { %v1462_v28 = vpop.f32.mrf.mxu0  ;;  %v577_v45 = vpop.f32.mrf.mxu1 }
  0xed   : > { %v1571_v30 = vpop.eup %1570  ;;  %v609_v31 = vpack.c.bf16 %v514_v26, %v511_v25  ;;  %v535_v39 = vadd.f32 %v1462_v28, %v1769_v55  ;;  %v578_v62 = vadd.f32 %v1769_v55, %v577_v45  ;;  %v618_v12 = vpack.c.bf16 %v586_v10, %v583_v8 }
  0xee   : > { %v1573_v32 = vpop.eup %1572  ;;  %v526_v33 = vpop.f32.mrf.mxu0  ;;  %1484 = vmatprep.mubr.msk.bf16.mxu1 %vm395_vm0, %v1571_v30 }
  0xef   : > { %1578 = vtanh.bf16 %v609_v31  ;;  %1485 = vmatmul.mubr.msk.bf16.vlgmr.msra.gmra.mxu1 %vm395_vm0, %v1573_v32  ;;  %v527_v42 = vadd.f32 %v1769_v55, %v526_v33  ;;  %v1478_v53 = vpop.f32.mrf.mxu1  ;;  %v617_v1 = vpack.c.bf16 %v578_v62, %v575_v61 }
  0xf0   : > { %1580 = vtanh.bf16 %v610_v27  ;;  %v1463_v36 = vpop.f32.mrf.mxu0  ;;  %v599_v15 = vadd.f32 %v1478_v53, %v1769_v55 }
  0xf1   : > { %v538_v38 = vadd.f32 %v1463_v36, %v1769_v55  ;;  %1582 = vtanh.bf16 %v613_v41  ;;  %v590_v57 = vpop.f32.mrf.mxu1 }
  0xf2   : > { %v529_v40 = vpop.f32.mrf.mxu0  ;;  %v591_v7 = vadd.f32 %v1769_v55, %v590_v57 }
  0xf3   : > { %v530_v43 = vadd.f32 %v1769_v55, %v529_v40  ;;  %v612_v44 = vpack.c.bf16 %v538_v38, %v535_v39  ;;  %v1479_v0 = vpop.f32.mrf.mxu1 }
  0xf4   : > { %v602_v16 = vadd.f32 %v1479_v0, %v1769_v55 }
  0xf5   : > { %v1575_v46 = vpop.eup %1574  ;;  %v611_v47 = vpack.c.bf16 %v530_v43, %v527_v42  ;;  %v593_v4 = vpop.f32.mrf.mxu1 }
  0xf6   : > { %v1577_v48 = vpop.eup %1576  ;;  %1488 = vmatprep.mubr.msk.bf16.mxu1 %vm395_vm0, %v1575_v46  ;;  %v594_v9 = vadd.f32 %v1769_v55, %v593_v4  ;;  %v620_v17 = vpack.c.bf16 %v602_v16, %v599_v15  ;;  %v1569_v55 = vld [vmem:[%s2069_s5] sm:$0xff]  }
  0xf7   : > { %1584 = vtanh.bf16 %v611_v47  ;;  %1489 = vmatmul.mubr.msk.bf16.gmra.mxu1 %vm395_vm0, %v1577_v48  ;;  %1518 = vmatprep.subr.bf16.mxu0 %v1569_v55 }
  0xf8   : > { %1586 = vtanh.bf16 %v612_v44  ;;  %v619_v11 = vpack.c.bf16 %v594_v9, %v591_v7  ;;  %1519 = vmatpush3.bf16.msra.mxu0 %v1569_v55 }
  0xf9   : > { %1588 = vtanh.bf16 %v615_v54 }
  0xfa   : > { %1590 = vtanh.bf16 %v614_v56 }
  0xfb   : > { %1592 = vtanh.bf16 %v617_v1 }
  0xfc   : > { %1594 = vtanh.bf16 %v616_v3 }
  0xfd   : > { %v1579_v59 = vpop.eup %1578  ;;  %1596 = vtanh.bf16 %v619_v11 }
  0xfe   : > { %v1581_v60 = vpop.eup %1580  ;;  %1492 = vmatprep.mubr.msk.bf16.mxu1 %vm395_vm0, %v1579_v59  ;;  %1598 = vtanh.bf16 %v618_v12 }
  0xff   : > { %1493 = vmatmul.mubr.msk.bf16.gmra.mxu1 %vm395_vm0, %v1581_v60  ;;  %v1583_v2 = vpop.eup %1582  ;;  %1600 = vtanh.bf16 %v620_v17 }
 0x105   : > { %v1585_v5 = vpop.eup %1584 }
 0x106   : > { %v1587_v6 = vpop.eup %1586  ;;  %1496 = vmatprep.mubr.msk.bf16.mxu1 %vm395_vm0, %v1585_v5 }
 0x107   : > { %1497 = vmatmul.mubr.msk.bf16.gmra.mxu1 %vm395_vm0, %v1587_v6  ;;  %v1589_v13 = vpop.eup %1588 }
 0x108   : > { %1500 = vmatprep.mubr.msk.bf16.mxu1 %vm395_vm0, %v1583_v2  ;;  %v1591_v14 = vpop.eup %1590 }
 0x109   : > { %v1593_v18 = vpop.eup %1592 }
 0x10a   : > { %v1595_v19 = vpop.eup %1594 }
 0x10b   : > { %v1597_v20 = vpop.eup %1596 }
 0x10c   : > { %v1599_v21 = vpop.eup %1598 }
 0x10d   : > { %v1601_v22 = vpop.eup %1600 }
 0x10f   : > { %1501 = vmatmul.mubr.msk.bf16.gmra.mxu1 %vm395_vm0, %v1591_v14 }
 0x110   : > { %1504 = vmatprep.mubr.msk.bf16.mxu1 %vm395_vm0, %v1589_v13 }
 0x117   : > { %1505 = vmatmul.mubr.msk.bf16.gmra.mxu1 %vm395_vm0, %v1595_v19 }
 0x118   : > { %1508 = vmatprep.mubr.msk.bf16.mxu1 %vm395_vm0, %v1593_v18 }
 0x11f   : > { %1509 = vmatmul.mubr.msk.bf16.gmra.mxu1 %vm395_vm0, %v1599_v21 }
 0x120   : > { %1512 = vmatprep.mubr.msk.bf16.mxu1 %vm395_vm0, %v1597_v20 }
 0x127   : > { %1513 = vmatmul.mubr.msk.bf16.gmra.mxu1 %vm395_vm0, %v1601_v22 }
 0x1af   : > { %v1486_v23 = vpop.f32.mrf.mxu1 }
 0x1b0   : > { %v751_v27 = vadd.f32 %v1486_v23, %v1834_v24 }
 0x1b1   : > { %v742_v25 = vpop.f32.mrf.mxu1 }
 0x1b2   : > { %v743_v30 = vadd.f32 %v1834_v24, %v742_v25 }
 0x1b3   : > { %v1487_v26 = vpop.f32.mrf.mxu1 }
 0x1b4   : > { %v754_v28 = vadd.f32 %v1487_v26, %v1834_v24 }
 0x1b5   : > { %v745_v29 = vpop.f32.mrf.mxu1 }
 0x1b6   : > { %v870_v31 = vpack.c.bf16 %v754_v28, %v751_v27  ;;  %v746_v32 = vadd.f32 %v1834_v24, %v745_v29 }
 0x1b7   : > { %v1490_v33 = vpop.f32.mrf.mxu1 }
 0x1b8   : > { %1602 = vtanh.bf16 %v870_v31  ;;  %v869_v34 = vpack.c.bf16 %v746_v32, %v743_v30  ;;  %v767_v37 = vadd.f32 %v1490_v33, %v1834_v24 }
 0x1b9   : > { %v758_v35 = vpop.f32.mrf.mxu1 }
 0x1ba   : > { %1604 = vtanh.bf16 %v869_v34  ;;  %v759_v40 = vadd.f32 %v1834_v24, %v758_v35 }
 0x1bb   : > { %v1491_v36 = vpop.f32.mrf.mxu1 }
 0x1bc   : > { %v770_v38 = vadd.f32 %v1491_v36, %v1834_v24 }
 0x1bd   : > { %v761_v39 = vpop.f32.mrf.mxu1 }
 0x1be   : > { %v872_v41 = vpack.c.bf16 %v770_v38, %v767_v37  ;;  %v762_v42 = vadd.f32 %v1834_v24, %v761_v39 }
 0x1bf   : > { %v1494_v43 = vpop.f32.mrf.mxu1 }
 0x1c0   : > { %1606 = vtanh.bf16 %v872_v41  ;;  %v871_v44 = vpack.c.bf16 %v762_v42, %v759_v40  ;;  %v783_v47 = vadd.f32 %v1494_v43, %v1834_v24 }
 0x1c1   : > { %v774_v45 = vpop.f32.mrf.mxu1 }
 0x1c2   : > { %1608 = vtanh.bf16 %v871_v44  ;;  %v775_v51 = vadd.f32 %v1834_v24, %v774_v45 }
 0x1c3   : > { %v1495_v46 = vpop.f32.mrf.mxu1 }
 0x1c4   : > { %v786_v48 = vadd.f32 %v1495_v46, %v1834_v24 }
 0x1c5   : > { %v777_v49 = vpop.f32.mrf.mxu1 }
 0x1c6   : > { %v1603_v50 = vpop.eup %1602  ;;  %v874_v52 = vpack.c.bf16 %v786_v48, %v783_v47  ;;  %v778_v53 = vadd.f32 %v1834_v24, %v777_v49 }
 0x1c7   : > { %v1135_v54 = vunpack.c.l.bf16 %v1603_v50  ;;  %v1136_v56 = vunpack.c.h.bf16 %v1603_v50  ;;  %v1498_v57 = vpop.f32.mrf.mxu1 }
 0x1c8   : > { %v1605_v59 = vpop.eup %1604  ;;  %1610 = vtanh.bf16 %v874_v52  ;;  %v873_v60 = vpack.c.bf16 %v778_v53, %v775_v51  ;;  %v799_v0 = vadd.f32 %v1498_v57, %v1834_v24 }
 0x1c9   : > { %1167 = vst.msk [vmem:[%s1850_s9 + $0x10] sm:$0xff] %vm395_vm0, %v1135_v54  ;;  %1168 = vst.msk [vmem:[%s1850_s9 + $0x18] sm:$0xff] %vm395_vm0, %v1136_v56  ;;  %v1133_v61 = vunpack.c.l.bf16 %v1605_v59  ;;  %v1134_v62 = vunpack.c.h.bf16 %v1605_v59  ;;  %v790_v58 = vpop.f32.mrf.mxu1  ;;  %1520 = vmatprep.mubr.msk.bf16.mxu0 %vm395_vm0, %v1605_v59 }
 0x1ca   : > { %1612 = vtanh.bf16 %v873_v60  ;;  %1521 = vmatmul.mubr.msk.bf16.vlgmr.msra.gmra.mxu0 %vm395_vm0, %v1603_v50  ;;  %v791_v4 = vadd.f32 %v1834_v24, %v790_v58 }
 0x1cb   : > { %1165 = vst.msk [vmem:[%s1850_s9] sm:$0xff] %vm395_vm0, %v1133_v61  ;;  %1166 = vst.msk [vmem:[%s1850_s9 + $0x8] sm:$0xff] %vm395_vm0, %v1134_v62  ;;  %v1499_v63 = vpop.f32.mrf.mxu1 }
 0x1cc   : > { %v802_v1 = vadd.f32 %v1499_v63, %v1834_v24 }
 0x1cd   : > { %v793_v2 = vpop.f32.mrf.mxu1 }
 0x1ce   : > { %v1607_v3 = vpop.eup %1606  ;;  %v876_v5 = vpack.c.bf16 %v802_v1, %v799_v0  ;;  %v794_v6 = vadd.f32 %v1834_v24, %v793_v2 }
 0x1cf   : > { %v1139_v7 = vunpack.c.l.bf16 %v1607_v3  ;;  %v1140_v9 = vunpack.c.h.bf16 %v1607_v3  ;;  %v1502_v8 = vpop.f32.mrf.mxu1 }
 0x1d0   : > { %v1609_v10 = vpop.eup %1608  ;;  %1614 = vtanh.bf16 %v876_v5  ;;  %v875_v11 = vpack.c.bf16 %v794_v6, %v791_v4  ;;  %v815_v16 = vadd.f32 %v1502_v8, %v1834_v24 }
 0x1d1   : > { %1171 = vst.msk [vmem:[%s1850_s9 + $0x30] sm:$0xff] %vm395_vm0, %v1139_v7  ;;  %1172 = vst.msk [vmem:[%s1850_s9 + $0x38] sm:$0xff] %vm395_vm0, %v1140_v9  ;;  %v1137_v12 = vunpack.c.l.bf16 %v1609_v10  ;;  %v1138_v13 = vunpack.c.h.bf16 %v1609_v10  ;;  %v806_v14 = vpop.f32.mrf.mxu1  ;;  %1524 = vmatprep.mubr.msk.bf16.mxu0 %vm395_vm0, %v1609_v10 }
 0x1d2   : > { %1616 = vtanh.bf16 %v875_v11  ;;  %1525 = vmatmul.mubr.msk.bf16.gmra.mxu0 %vm395_vm0, %v1607_v3  ;;  %v807_v20 = vadd.f32 %v1834_v24, %v806_v14 }
 0x1d3   : > { %1169 = vst.msk [vmem:[%s1850_s9 + $0x20] sm:$0xff] %vm395_vm0, %v1137_v12  ;;  %1170 = vst.msk [vmem:[%s1850_s9 + $0x28] sm:$0xff] %vm395_vm0, %v1138_v13  ;;  %v1503_v15 = vpop.f32.mrf.mxu1 }
 0x1d4   : > { %v818_v17 = vadd.f32 %v1503_v15, %v1834_v24 }
 0x1d5   : > { %v809_v18 = vpop.f32.mrf.mxu1 }
 0x1d6   : > { %v1611_v19 = vpop.eup %1610  ;;  %v878_v21 = vpack.c.bf16 %v818_v17, %v815_v16  ;;  %v810_v22 = vadd.f32 %v1834_v24, %v809_v18 }
 0x1d7   : > { %v1143_v55 = vunpack.c.l.bf16 %v1611_v19  ;;  %v1144_v23 = vunpack.c.h.bf16 %v1611_v19  ;;  %v1506_v25 = vpop.f32.mrf.mxu1 }
 0x1d8   : > { %v1613_v26 = vpop.eup %1612  ;;  %1618 = vtanh.bf16 %v878_v21  ;;  %v877_v27 = vpack.c.bf16 %v810_v22, %v807_v20  ;;  %v831_v32 = vadd.f32 %v1506_v25, %v1834_v24  ;;  %v1957_v25 = vld [vmem:[%s2070_s6] ss:$0 sm:$0xff] }
 0x1d9   : > { %1175 = vst.msk [vmem:[%s1850_s9 + $0x50] sm:$0xff] %vm395_vm0, %v1143_v55  ;;  %1176 = vst.msk [vmem:[%s1850_s9 + $0x58] sm:$0xff] %vm395_vm0, %v1144_v23  ;;  %v1141_v28 = vunpack.c.l.bf16 %v1613_v26  ;;  %v1142_v29 = vunpack.c.h.bf16 %v1613_v26  ;;  %v822_v30 = vpop.f32.mrf.mxu1  ;;  %1528 = vmatprep.mubr.msk.bf16.mxu0 %vm395_vm0, %v1613_v26 }
 0x1da   : > { %1620 = vtanh.bf16 %v877_v27  ;;  %1529 = vmatmul.mubr.msk.bf16.gmra.mxu0 %vm395_vm0, %v1611_v19  ;;  %v823_v36 = vadd.f32 %v1834_v24, %v822_v30 }
 0x1db   : > { %1173 = vst.msk [vmem:[%s1850_s9 + $0x40] sm:$0xff] %vm395_vm0, %v1141_v28  ;;  %1174 = vst.msk [vmem:[%s1850_s9 + $0x48] sm:$0xff] %vm395_vm0, %v1142_v29  ;;  %v1507_v31 = vpop.f32.mrf.mxu1 }
 0x1dc   : > { %v834_v33 = vadd.f32 %v1507_v31, %v1834_v24 }
 0x1dd   : > { %v825_v34 = vpop.f32.mrf.mxu1 }
 0x1de   : > { %v1615_v35 = vpop.eup %1614  ;;  %v880_v37 = vpack.c.bf16 %v834_v33, %v831_v32  ;;  %v826_v38 = vadd.f32 %v1834_v24, %v825_v34 }
 0x1df   : > { %v1147_v39 = vunpack.c.l.bf16 %v1615_v35  ;;  %v1148_v40 = vunpack.c.h.bf16 %v1615_v35  ;;  %v1510_v41 = vpop.f32.mrf.mxu1 }
 0x1e0   : > { %v1617_v42 = vpop.eup %1616  ;;  %1622 = vtanh.bf16 %v880_v37  ;;  %v879_v43 = vpack.c.bf16 %v826_v38, %v823_v36  ;;  %v847_v48 = vadd.f32 %v1510_v41, %v1834_v24 }
 0x1e1   : > { %1179 = vst.msk [vmem:[%s1850_s9 + $0x70] sm:$0xff] %vm395_vm0, %v1147_v39  ;;  %1180 = vst.msk [vmem:[%s1850_s9 + $0x78] sm:$0xff] %vm395_vm0, %v1148_v40  ;;  %v1145_v44 = vunpack.c.l.bf16 %v1617_v42  ;;  %v1146_v45 = vunpack.c.h.bf16 %v1617_v42  ;;  %v838_v46 = vpop.f32.mrf.mxu1  ;;  %1532 = vmatprep.mubr.msk.bf16.mxu0 %vm395_vm0, %v1617_v42 }
 0x1e2   : > { %1624 = vtanh.bf16 %v879_v43  ;;  %1533 = vmatmul.mubr.msk.bf16.gmra.mxu0 %vm395_vm0, %v1615_v35  ;;  %v839_v52 = vadd.f32 %v1834_v24, %v838_v46 }
 0x1e3   : > { %1177 = vst.msk [vmem:[%s1850_s9 + $0x60] sm:$0xff] %vm395_vm0, %v1145_v44  ;;  %1178 = vst.msk [vmem:[%s1850_s9 + $0x68] sm:$0xff] %vm395_vm0, %v1146_v45  ;;  %v1511_v47 = vpop.f32.mrf.mxu1 }
 0x1e4   : > { %v850_v49 = vadd.f32 %v1511_v47, %v1834_v24 }
 0x1e5   : > { %v841_v50 = vpop.f32.mrf.mxu1 }
 0x1e6   : > { %v1619_v51 = vpop.eup %1618  ;;  %v882_v53 = vpack.c.bf16 %v850_v49, %v847_v48  ;;  %v842_v54 = vadd.f32 %v1834_v24, %v841_v50 }
 0x1e7   : > { %v1151_v56 = vunpack.c.l.bf16 %v1619_v51  ;;  %v1152_v57 = vunpack.c.h.bf16 %v1619_v51  ;;  %v1514_v59 = vpop.f32.mrf.mxu1 }
 0x1e8   : > { %v1621_v60 = vpop.eup %1620  ;;  %1626 = vtanh.bf16 %v882_v53  ;;  %v881_v61 = vpack.c.bf16 %v842_v54, %v839_v52  ;;  %v863_v1 = vadd.f32 %v1514_v59, %v1834_v24 }
 0x1e9   : > { %1183 = vst.msk [vmem:[%s1850_s9 + $0x90] sm:$0xff] %vm395_vm0, %v1151_v56  ;;  %1184 = vst.msk [vmem:[%s1850_s9 + $0x98] sm:$0xff] %vm395_vm0, %v1152_v57  ;;  %v1149_v62 = vunpack.c.l.bf16 %v1621_v60  ;;  %v1150_v58 = vunpack.c.h.bf16 %v1621_v60  ;;  %v854_v63 = vpop.f32.mrf.mxu1  ;;  %1536 = vmatprep.mubr.msk.bf16.mxu0 %vm395_vm0, %v1621_v60 }
 0x1ea   : > { %1628 = vtanh.bf16 %v881_v61  ;;  %1537 = vmatmul.mubr.msk.bf16.gmra.mxu0 %vm395_vm0, %v1619_v51  ;;  %v855_v5 = vadd.f32 %v1834_v24, %v854_v63 }
 0x1eb   : > { %1181 = vst.msk [vmem:[%s1850_s9 + $0x80] sm:$0xff] %vm395_vm0, %v1149_v62  ;;  %1182 = vst.msk [vmem:[%s1850_s9 + $0x88] sm:$0xff] %vm395_vm0, %v1150_v58  ;;  %v1515_v0 = vpop.f32.mrf.mxu1 }
 0x1ec   : > { %v866_v2 = vadd.f32 %v1515_v0, %v1834_v24 }
 0x1ed   : > { %v857_v3 = vpop.f32.mrf.mxu1 }
 0x1ee   : > { %v1623_v4 = vpop.eup %1622  ;;  %v884_v6 = vpack.c.bf16 %v866_v2, %v863_v1  ;;  %v858_v7 = vadd.f32 %v1834_v24, %v857_v3 }
 0x1ef   : > { %v1155_v9 = vunpack.c.l.bf16 %v1623_v4  ;;  %v1156_v8 = vunpack.c.h.bf16 %v1623_v4 }
 0x1f0   : > { %v1625_v10 = vpop.eup %1624  ;;  %1630 = vtanh.bf16 %v884_v6  ;;  %v883_v11 = vpack.c.bf16 %v858_v7, %v855_v5 }
 0x1f1   : > { %1187 = vst.msk [vmem:[%s1850_s9 + $0xb0] sm:$0xff] %vm395_vm0, %v1155_v9  ;;  %1188 = vst.msk [vmem:[%s1850_s9 + $0xb8] sm:$0xff] %vm395_vm0, %v1156_v8  ;;  %v1153_v12 = vunpack.c.l.bf16 %v1625_v10  ;;  %v1154_v13 = vunpack.c.h.bf16 %v1625_v10  ;;  %1540 = vmatprep.mubr.msk.bf16.mxu0 %vm395_vm0, %v1625_v10 }
 0x1f2   : > { %1632 = vtanh.bf16 %v883_v11  ;;  %1541 = vmatmul.mubr.msk.bf16.gmra.mxu0 %vm395_vm0, %v1623_v4 }
 0x1f3   : > { %1185 = vst.msk [vmem:[%s1850_s9 + $0xa0] sm:$0xff] %vm395_vm0, %v1153_v12  ;;  %1186 = vst.msk [vmem:[%s1850_s9 + $0xa8] sm:$0xff] %vm395_vm0, %v1154_v13 }
 0x1f6   : > { %v1627_v24 = vpop.eup %1626 }
 0x1f7   : > { %v1159_v14 = vunpack.c.l.bf16 %v1627_v24  ;;  %v1160_v15 = vunpack.c.h.bf16 %v1627_v24 }
 0x1f8   : > { %v1629_v16 = vpop.eup %1628 }
 0x1f9   : > { %1191 = vst.msk [vmem:[%s1850_s9 + $0xd0] sm:$0xff] %vm395_vm0, %v1159_v14  ;;  %1192 = vst.msk [vmem:[%s1850_s9 + $0xd8] sm:$0xff] %vm395_vm0, %v1160_v15  ;;  %v1157_v17 = vunpack.c.l.bf16 %v1629_v16  ;;  %v1158_v18 = vunpack.c.h.bf16 %v1629_v16  ;;  %1544 = vmatprep.mubr.msk.bf16.mxu0 %vm395_vm0, %v1629_v16 }
 0x1fa   : > { %1545 = vmatmul.mubr.msk.bf16.gmra.mxu0 %vm395_vm0, %v1627_v24 }
 0x1fb   : > { %1189 = vst.msk [vmem:[%s1850_s9 + $0xc0] sm:$0xff] %vm395_vm0, %v1157_v17  ;;  %1190 = vst.msk [vmem:[%s1850_s9 + $0xc8] sm:$0xff] %vm395_vm0, %v1158_v18 }
 0x1fe   : > { %v1631_v19 = vpop.eup %1630 }
 0x1ff   : > { %v1163_v20 = vunpack.c.l.bf16 %v1631_v19  ;;  %v1164_v21 = vunpack.c.h.bf16 %v1631_v19 }
 0x200   : > { %v1633_v22 = vpop.eup %1632 }
 0x201   : > { %1195 = vst.msk [vmem:[%s1850_s9 + $0xf0] sm:$0xff] %vm395_vm0, %v1163_v20  ;;  %1196 = vst.msk [vmem:[%s1850_s9 + $0xf8] sm:$0xff] %vm395_vm0, %v1164_v21  ;;  %v1161_v55 = vunpack.c.l.bf16 %v1633_v22  ;;  %v1162_v23 = vunpack.c.h.bf16 %v1633_v22  ;;  %1548 = vmatprep.mubr.msk.bf16.mxu0 %vm395_vm0, %v1633_v22 }
 0x202   : > { %1549 = vmatmul.mubr.msk.bf16.gmra.mxu0 %vm395_vm0, %v1631_v19 }
 0x203   : > { %1193 = vst.msk [vmem:[%s1850_s9 + $0xe0] sm:$0xff] %vm395_vm0, %v1161_v55  ;;  %1194 = vst.msk [vmem:[%s1850_s9 + $0xe8] sm:$0xff] %vm395_vm0, %v1162_v23 }
 0x28a   : > { %v1522_v26 = vpop.f32.mrf.mxu0 }
 0x28b   : > { %v1015_v27 = vadd.f32 %v1522_v26, %v1957_v25 }
 0x28c   : > { %v1006_v28 = vpop.f32.mrf.mxu0 }
 0x28d   : > { %1200 = vst.msk [vmem:[%s1963_s15 + $0x10] sm:$0xff] %vm1197_vm1, %v1015_v27  ;;  %v1007_v29 = vadd.f32 %v1957_v25, %v1006_v28 }
 0x28e   : > { %v1523_v30 = vpop.f32.mrf.mxu0 }
 0x28f   : > { %1198 = vst.msk [vmem:[%s1963_s15] sm:$0xff] %vm1197_vm1, %v1007_v29  ;;  %v1018_v31 = vadd.f32 %v1523_v30, %v1957_v25 }
 0x290   : > { %v1009_v32 = vpop.f32.mrf.mxu0 }
 0x291   : > { %1201 = vst.msk [vmem:[%s1963_s15 + $0x18] sm:$0xff] %vm1197_vm1, %v1018_v31  ;;  %v1010_v33 = vadd.f32 %v1957_v25, %v1009_v32 }
 0x292   : > { %v1526_v34 = vpop.f32.mrf.mxu0 }
 0x293   : > { %1199 = vst.msk [vmem:[%s1963_s15 + $0x8] sm:$0xff] %vm1197_vm1, %v1010_v33  ;;  %v1031_v35 = vadd.f32 %v1526_v34, %v1957_v25 }
 0x294   : > { %v1022_v36 = vpop.f32.mrf.mxu0 }
 0x295   : > { %1204 = vst.msk [vmem:[%s1963_s15 + $0x30] sm:$0xff] %vm1197_vm1, %v1031_v35  ;;  %v1023_v37 = vadd.f32 %v1957_v25, %v1022_v36 }
 0x296   : > { %v1527_v38 = vpop.f32.mrf.mxu0 }
 0x297   : > { %1202 = vst.msk [vmem:[%s1963_s15 + $0x20] sm:$0xff] %vm1197_vm1, %v1023_v37  ;;  %v1034_v39 = vadd.f32 %v1527_v38, %v1957_v25 }
 0x298   : > { %v1025_v40 = vpop.f32.mrf.mxu0 }
 0x299   : > { %1205 = vst.msk [vmem:[%s1963_s15 + $0x38] sm:$0xff] %vm1197_vm1, %v1034_v39  ;;  %v1026_v41 = vadd.f32 %v1957_v25, %v1025_v40 }
 0x29a   : > { %v1530_v42 = vpop.f32.mrf.mxu0 }
 0x29b   : > { %1203 = vst.msk [vmem:[%s1963_s15 + $0x28] sm:$0xff] %vm1197_vm1, %v1026_v41  ;;  %v1047_v43 = vadd.f32 %v1530_v42, %v1957_v25 }
 0x29c   : > { %v1038_v44 = vpop.f32.mrf.mxu0 }
 0x29d   : > { %1208 = vst.msk [vmem:[%s1963_s15 + $0x50] sm:$0xff] %vm1197_vm1, %v1047_v43  ;;  %v1039_v45 = vadd.f32 %v1957_v25, %v1038_v44 }
 0x29e   : > { %v1531_v46 = vpop.f32.mrf.mxu0 }
 0x29f   : > { %1206 = vst.msk [vmem:[%s1963_s15 + $0x40] sm:$0xff] %vm1197_vm1, %v1039_v45  ;;  %v1050_v47 = vadd.f32 %v1531_v46, %v1957_v25 }
 0x2a0   : > { %v1041_v48 = vpop.f32.mrf.mxu0 }
 0x2a1   : > { %1209 = vst.msk [vmem:[%s1963_s15 + $0x58] sm:$0xff] %vm1197_vm1, %v1050_v47  ;;  %v1042_v49 = vadd.f32 %v1957_v25, %v1041_v48 }
 0x2a2   : > { %v1534_v50 = vpop.f32.mrf.mxu0 }
 0x2a3   : > { %1207 = vst.msk [vmem:[%s1963_s15 + $0x48] sm:$0xff] %vm1197_vm1, %v1042_v49  ;;  %v1063_v51 = vadd.f32 %v1534_v50, %v1957_v25 }
 0x2a4   : > { %v1054_v52 = vpop.f32.mrf.mxu0 }
 0x2a5   : > { %1212 = vst.msk [vmem:[%s1963_s15 + $0x70] sm:$0xff] %vm1197_vm1, %v1063_v51  ;;  %v1055_v53 = vadd.f32 %v1957_v25, %v1054_v52 }
 0x2a6   : > { %v1535_v54 = vpop.f32.mrf.mxu0 }
 0x2a7   : > { %1210 = vst.msk [vmem:[%s1963_s15 + $0x60] sm:$0xff] %vm1197_vm1, %v1055_v53  ;;  %v1066_v56 = vadd.f32 %v1535_v54, %v1957_v25 }
 0x2a8   : > { %v1057_v57 = vpop.f32.mrf.mxu0 }
 0x2a9   : > { %1213 = vst.msk [vmem:[%s1963_s15 + $0x78] sm:$0xff] %vm1197_vm1, %v1066_v56  ;;  %v1058_v59 = vadd.f32 %v1957_v25, %v1057_v57 }
 0x2aa   : > { %v1538_v60 = vpop.f32.mrf.mxu0 }
 0x2ab   : > { %1211 = vst.msk [vmem:[%s1963_s15 + $0x68] sm:$0xff] %vm1197_vm1, %v1058_v59  ;;  %v1079_v61 = vadd.f32 %v1538_v60, %v1957_v25 }
 0x2ac   : > { %v1070_v62 = vpop.f32.mrf.mxu0 }
 0x2ad   : > { %1216 = vst.msk [vmem:[%s1963_s15 + $0x90] sm:$0xff] %vm1197_vm1, %v1079_v61  ;;  %v1071_v58 = vadd.f32 %v1957_v25, %v1070_v62 }
 0x2ae   : > { %v1539_v63 = vpop.f32.mrf.mxu0 }
 0x2af   : > { %1214 = vst.msk [vmem:[%s1963_s15 + $0x80] sm:$0xff] %vm1197_vm1, %v1071_v58  ;;  %v1082_v0 = vadd.f32 %v1539_v63, %v1957_v25 }
 0x2b0   : > { %v1073_v1 = vpop.f32.mrf.mxu0 }
 0x2b1   : > { %1217 = vst.msk [vmem:[%s1963_s15 + $0x98] sm:$0xff] %vm1197_vm1, %v1082_v0  ;;  %v1074_v2 = vadd.f32 %v1957_v25, %v1073_v1 }
 0x2b2   : > { %v1542_v3 = vpop.f32.mrf.mxu0 }
 0x2b3   : > { %1215 = vst.msk [vmem:[%s1963_s15 + $0x88] sm:$0xff] %vm1197_vm1, %v1074_v2  ;;  %v1095_v4 = vadd.f32 %v1542_v3, %v1957_v25 }
 0x2b4   : > { %v1086_v5 = vpop.f32.mrf.mxu0 }
 0x2b5   : > { %1220 = vst.msk [vmem:[%s1963_s15 + $0xb0] sm:$0xff] %vm1197_vm1, %v1095_v4  ;;  %v1087_v6 = vadd.f32 %v1957_v25, %v1086_v5 }
 0x2b6   : > { %v1543_v7 = vpop.f32.mrf.mxu0 }
 0x2b7   : > { %1218 = vst.msk [vmem:[%s1963_s15 + $0xa0] sm:$0xff] %vm1197_vm1, %v1087_v6  ;;  %v1098_v9 = vadd.f32 %v1543_v7, %v1957_v25 }
 0x2b8   : > { %v1089_v8 = vpop.f32.mrf.mxu0 }
 0x2b9   : > { %1221 = vst.msk [vmem:[%s1963_s15 + $0xb8] sm:$0xff] %vm1197_vm1, %v1098_v9  ;;  %v1090_v10 = vadd.f32 %v1957_v25, %v1089_v8 }
 0x2ba   : > { %v1546_v11 = vpop.f32.mrf.mxu0 }
 0x2bb   : > { %1219 = vst.msk [vmem:[%s1963_s15 + $0xa8] sm:$0xff] %vm1197_vm1, %v1090_v10  ;;  %v1111_v12 = vadd.f32 %v1546_v11, %v1957_v25 }
 0x2bc   : > { %v1102_v13 = vpop.f32.mrf.mxu0 }
 0x2bd   : > { %1224 = vst.msk [vmem:[%s1963_s15 + $0xd0] sm:$0xff] %vm1197_vm1, %v1111_v12  ;;  %v1103_v24 = vadd.f32 %v1957_v25, %v1102_v13 }
 0x2be   : > { %v1547_v14 = vpop.f32.mrf.mxu0 }
 0x2bf   : > { %1222 = vst.msk [vmem:[%s1963_s15 + $0xc0] sm:$0xff] %vm1197_vm1, %v1103_v24  ;;  %v1114_v15 = vadd.f32 %v1547_v14, %v1957_v25 }
 0x2c0   : > { %v1105_v16 = vpop.f32.mrf.mxu0 }
 0x2c1   : > { %1225 = vst.msk [vmem:[%s1963_s15 + $0xd8] sm:$0xff] %vm1197_vm1, %v1114_v15  ;;  %v1106_v17 = vadd.f32 %v1957_v25, %v1105_v16 }
 0x2c2   : > { %v1550_v18 = vpop.f32.mrf.mxu0 }
 0x2c3   : > { %1223 = vst.msk [vmem:[%s1963_s15 + $0xc8] sm:$0xff] %vm1197_vm1, %v1106_v17  ;;  %v1127_v19 = vadd.f32 %v1550_v18, %v1957_v25 }
 0x2c4   : > { %v1118_v20 = vpop.f32.mrf.mxu0 }
 0x2c5   : > { %1228 = vst.msk [vmem:[%s1963_s15 + $0xf0] sm:$0xff] %vm1197_vm1, %v1127_v19  ;;  %v1119_v21 = vadd.f32 %v1957_v25, %v1118_v20 }
 0x2c6   : > { %v1551_v22 = vpop.f32.mrf.mxu0 }
 0x2c7   : > { %1226 = vst.msk [vmem:[%s1963_s15 + $0xe0] sm:$0xff] %vm1197_vm1, %v1119_v21  ;;  %v1130_v55 = vadd.f32 %v1551_v22, %v1957_v25 }
 0x2c8   : > { %v1121_v23 = vpop.f32.mrf.mxu0 }
 0x2c9   : > { %1229 = vst.msk [vmem:[%s1963_s15 + $0xf8] sm:$0xff] %vm1197_vm1, %v1130_v55  ;;  %v1122_v26 = vadd.f32 %v1957_v25, %v1121_v23 }
 0x2cb   : > { %1227 = vst.msk [vmem:[%s1963_s15 + $0xe8] sm:$0xff] %vm1197_vm1, %v1122_v26 }
 0x2cc PF: > { %s19_s27 = sadd.s32 1, %s1640_s27  }
 0x2cd   : > { %p16_p4 = scmp.ge.s32.totalorder %s19_s27, 4  }
 0x2cf   :  { %18 = sbr.rel (!%p16_p4) target bundleno = 1 (0x1), region = 90 }

</bundles_post_ra>
